<compile_context>
chip_gen: v5e
topology: v5e:2x2
jax: 0.10.0
libtpu: 0.0.40
codegen_flags: <defaults>
</compile_context>

<pallas_src>
import jax
import jax.numpy as jnp
from jax.experimental import pallas as pl
from jax.experimental.pallas import tpu as pltpu

EPS = 1e-5


def _round_up(a, b):
    return ((a + b - 1) // b) * b


# -----------------------------------------------------------------------------
# Kernels.  All matmuls feed the MXU bf16 operands and accumulate in f32; bias,
# ReLU and the residual add are done in f32.
# -----------------------------------------------------------------------------

def _kernel_identity(x_ref, w0t_ref, b0_ref, w1t_ref, b1_ref, o_ref):
    x = x_ref[...].astype(jnp.float32)
    x_bf = x.astype(jnp.bfloat16)
    net = jnp.maximum(
        jnp.dot(x_bf, w0t_ref[...], preferred_element_type=jnp.float32)
        + b0_ref[...], 0.0)
    dx = jnp.dot(net.astype(jnp.bfloat16), w1t_ref[...],
                 preferred_element_type=jnp.float32)
    o_ref[...] = jnp.maximum(x + dx + b1_ref[...], 0.0).astype(o_ref.dtype)


def _kernel_shortcut_fused(x_ref, w0t_ref, b0_ref, rhs_ref, b1_ref, o_ref):
    # rhs = [sc_w^T ; fc1_w^T] : (c_in + c_h, c_out); lhs = [x | net]
    # -> one K = c_in + c_h MXU pass gives x_s + dx directly in the accumulator.
    x_bf = x_ref[...].astype(jnp.bfloat16)
    net = jnp.maximum(
        jnp.dot(x_bf, w0t_ref[...], preferred_element_type=jnp.float32)
        + b0_ref[...], 0.0)
    lhs = jnp.concatenate([x_bf, net.astype(jnp.bfloat16)], axis=-1)
    acc = jnp.dot(lhs, rhs_ref[...], preferred_element_type=jnp.float32)
    o_ref[...] = jnp.maximum(acc + b1_ref[...], 0.0).astype(o_ref.dtype)


def _kernel_shortcut_split(x_ref, w0t_ref, b0_ref, sct_ref, w1t_ref, b1_ref,
                           o_ref):
    x_bf = x_ref[...].astype(jnp.bfloat16)
    net = jnp.maximum(
        jnp.dot(x_bf, w0t_ref[...], preferred_element_type=jnp.float32)
        + b0_ref[...], 0.0)
    acc = jnp.dot(x_bf, sct_ref[...], preferred_element_type=jnp.float32)
    acc = acc + jnp.dot(net.astype(jnp.bfloat16), w1t_ref[...],
                        preferred_element_type=jnp.float32)
    o_ref[...] = jnp.maximum(acc + b1_ref[...], 0.0).astype(o_ref.dtype)


# -----------------------------------------------------------------------------
# Host-side one-time weight preparation (hoisted out of the per-call path).
# -----------------------------------------------------------------------------

def prepare_params(params):
    """Fold eval-mode bn0 into fc_0, pre-transpose, cast matmul operands to
    bf16, and (when lane-aligned) concatenate shortcut/fc_1 weights for the
    fused residual matmul.  Call once; reuse across forwards."""
    w0 = params["fc0_w"].astype(jnp.float32)            # (c_h, c_in)
    w1 = params["fc1_w"].astype(jnp.float32)            # (c_out, c_h)
    c_in = w0.shape[1]

    # bn0 sits directly on fc_0's output (no activation between them):
    #   bn0(fc0(x)) = x @ (scale*W0)^T + (scale*(b0 - rm) + beta)
    scale = params["bn0_g"] / jnp.sqrt(params["bn0_rv"] + EPS)
    w0f = w0 * scale[:, None]
    b0f = scale * (params["fc0_b"] - params["bn0_rm"]) + params["bn0_b"]

    prepped = {
        "w0t": jnp.transpose(w0f).astype(jnp.bfloat16),            # (c_in, c_h)
        "b0": b0f.reshape(1, -1).astype(jnp.float32),              # (1, c_h)
        "b1": params["fc1_b"].reshape(1, -1).astype(jnp.float32),  # (1, c_out)
    }
    w1t = jnp.transpose(w1).astype(jnp.bfloat16)                   # (c_h, c_out)
    if params.get("sc_w") is None:
        prepped["w1t"] = w1t
    else:
        sct = jnp.transpose(
            params["sc_w"].astype(jnp.float32)).astype(jnp.bfloat16)  # (c_in, c_out)
        if c_in % 128 == 0:
            # Fused residual matmul (lane-aligned concat in-kernel is free-ish).
            prepped["rhs_fused"] = jnp.concatenate([sct, w1t], axis=0)
        else:
            prepped["sct"] = sct
            prepped["w1t"] = w1t
    return prepped


# -----------------------------------------------------------------------------
# Forward.
# -----------------------------------------------------------------------------

def resnet_block_fc(x, prepped, *, tile_n=2048):
    """x: (N, size_in) float32 -> (N, size_out) float32 (eval-mode bn0)."""
    N, c_in = x.shape
    c_h = prepped["w0t"].shape[1]
    c_out = prepped["b1"].shape[1]
    fused = "rhs_fused" in prepped
    split = "sct" in prepped
    if not (fused or split):
        # identity shortcut adds x (c_in lanes) to dx (c_out lanes)
        assert c_in == c_out, "identity shortcut requires size_in == size_out"

    # Row tiling: no padding of N.  The last tile may be ragged (Pallas masks
    # its writeback; garbage rows are row-local and never affect real rows).
    # For small N, shrink the tile so the 'parallel' grid has >= 2 steps and
    # both v7x TensorCores get work / steps pipeline.
    if N <= tile_n:
        half = _round_up(pl.cdiv(N, 2), 8)
        tile_n = half if half < N else N
    grid = (pl.cdiv(N, tile_n),)

    args = [x, prepped["w0t"], prepped["b0"]]
    in_specs = [
        pl.BlockSpec((tile_n, c_in), lambda i: (i, 0)),
        pl.BlockSpec((c_in, c_h), lambda i: (0, 0)),
        pl.BlockSpec((1, c_h), lambda i: (0, 0)),
    ]
    if fused:
        kernel = _kernel_shortcut_fused
        args += [prepped["rhs_fused"], prepped["b1"]]
        in_specs += [
            pl.BlockSpec((c_in + c_h, c_out), lambda i: (0, 0)),
            pl.BlockSpec((1, c_out), lambda i: (0, 0)),
        ]
    elif split:
        kernel = _kernel_shortcut_split
        args += [prepped["sct"], prepped["w1t"], prepped["b1"]]
        in_specs += [
            pl.BlockSpec((c_in, c_out), lambda i: (0, 0)),
            pl.BlockSpec((c_h, c_out), lambda i: (0, 0)),
            pl.BlockSpec((1, c_out), lambda i: (0, 0)),
        ]
    else:
        kernel = _kernel_identity
        args += [prepped["w1t"], prepped["b1"]]
        in_specs += [
            pl.BlockSpec((c_h, c_out), lambda i: (0, 0)),
            pl.BlockSpec((1, c_out), lambda i: (0, 0)),
        ]

    return pl.pallas_call(
        kernel,
        out_shape=jax.ShapeDtypeStruct((N, c_out), x.dtype),
        grid=grid,
        in_specs=in_specs,
        out_specs=pl.BlockSpec((tile_n, c_out), lambda i: (i, 0)),
        compiler_params=pltpu.CompilerParams(
            dimension_semantics=("parallel",)),
    )(*args)


# -----------------------------------------------------------------------------
# Pure-JAX reference (f32) mirroring the PyTorch forward with eval-mode BN.
# -----------------------------------------------------------------------------

def reference(x, params):
    scale = params["bn0_g"] / jnp.sqrt(params["bn0_rv"] + EPS)
    y = x @ params["fc0_w"].T + params["fc0_b"]
    y = (y - params["bn0_rm"]) * scale + params["bn0_b"]
    net = jax.nn.relu(y)
    dx = net @ params["fc1_w"].T + params["fc1_b"]
    if params.get("sc_w") is not None:
        x_s = x @ params["sc_w"].T
    else:
        x_s = x
    return jax.nn.relu(x_s + dx)


def init_params(key, size_in, size_out=None, size_h=None):
    if size_out is None:
        size_out = size_in
    if size_h is None:
        size_h = min(size_in, size_out)
    # The PyTorch module constructs BatchNorm1d(size_out) but applies it to the
    # fc_0 output (size_h features); it only runs when size_h == size_out,
    # which the default size_h = min(size_in, size_out) guarantees whenever
    # size_out <= size_in.
    assert size_h == size_out, "ResnetBlockFC only runs when size_h == size_out"
    ks = jax.random.split(key, 9)
    p = {
        # Linear(size_in, size_h)
        "fc0_w": jax.random.normal(ks[0], (size_h, size_in), jnp.float32)
                 / jnp.sqrt(size_in),
        "fc0_b": 0.1 * jax.random.normal(ks[1], (size_h,), jnp.float32),
        # Linear(size_h, size_out)
        "fc1_w": jax.random.normal(ks[2], (size_out, size_h), jnp.float32)
                 / jnp.sqrt(size_h),
        "fc1_b": 0.1 * jax.random.normal(ks[3], (size_out,), jnp.float32),
        # BatchNorm1d over the fc_0 output features (eval-mode running stats)
        "bn0_g": 1.0 + 0.1 * jax.random.normal(ks[4], (size_h,), jnp.float32),
        "bn0_b": 0.1 * jax.random.normal(ks[5], (size_h,), jnp.float32),
        "bn0_rm": 0.1 * jax.random.normal(ks[6], (size_h,), jnp.float32),
        "bn0_rv": 1.0 + 0.1 * jax.random.uniform(ks[7], (size_h,), jnp.float32),
    }
    if size_in == size_out:
        p["sc_w"] = None  # identity shortcut
    else:
        p["sc_w"] = (jax.random.normal(ks[8], (size_out, size_in), jnp.float32)
                     / jnp.sqrt(size_in))
    return p


if __name__ == "__main__":
    key = jax.random.PRNGKey(0)

    configs = [
        # (size_in, size_out, N)
        (128, 64, 200),    # Linear shortcut, c_in lane-aligned -> fused matmul
        (96, 64, 1025),    # Linear shortcut, unaligned c_in -> split path; ragged N
        (64, 64, 200),     # identity shortcut
    ]

    fwd = jax.jit(resnet_block_fc, static_argnames=("tile_n",))

    for idx, (size_in, size_out, N) in enumerate(configs):
        kx, kp = jax.random.split(jax.random.fold_in(key, idx))
        x = jax.random.normal(kx, (N, size_in), jnp.float32)
        params = init_params(kp, size_in, size_out)
        prepped = prepare_params(params)      # one-time weight prep (hoisted)

        out = jax.block_until_ready(fwd(x, prepped))
        ref = jax.block_until_ready(reference(x, params))

        assert out.shape == (N, size_out), out.shape
        # bf16 MXU inputs with f32 accumulation -> looser tolerance than f32.
        assert jnp.allclose(out, ref, atol=5e-2, rtol=5e-2), (
            idx, float(jnp.max(jnp.abs(out - ref))))

    print("KERNEL_OK")
</pallas_src>

<mosaic_0001>
module attributes {stable_mosaic.version = 11 : i64} {
  func.func @_kernel_shortcut_fused(%arg0: i32, %arg1: memref<104x128xf32, #tpu.memory_space<vmem>>, %arg2: memref<128x64xbf16, #tpu.memory_space<vmem>>, %arg3: memref<1x64xf32, #tpu.memory_space<vmem>>, %arg4: memref<192x64xbf16, #tpu.memory_space<vmem>>, %arg5: memref<1x64xf32, #tpu.memory_space<vmem>>, %arg6: memref<104x64xf32, #tpu.memory_space<vmem>>) attributes {dimension_semantics = [#tpu.dimension_semantics<parallel>], iteration_bounds = array<i64: 2>, scalar_prefetch = 0 : i64, scratch_operands = 0 : i64, tpu.core_type = #tpu.core_type<tc>, window_params = [{transform_indices = @transform_0, window_bounds = array<i64: 104, 128>}, {pipeline_mode = #tpu.pipeline_mode<synchronous>, transform_indices = @transform_1, window_bounds = array<i64: 128, 64>}, {pipeline_mode = #tpu.pipeline_mode<synchronous>, transform_indices = @transform_2, window_bounds = array<i64: 1, 64>}, {pipeline_mode = #tpu.pipeline_mode<synchronous>, transform_indices = @transform_3, window_bounds = array<i64: 192, 64>}, {pipeline_mode = #tpu.pipeline_mode<synchronous>, transform_indices = @transform_4, window_bounds = array<i64: 1, 64>}, {transform_indices = @transform_5, window_bounds = array<i64: 104, 64>}]} {
    %c0 = arith.constant 0 : index
    %c0_0 = arith.constant 0 : index
    %0 = vector.load %arg1[%c0, %c0_0] : memref<104x128xf32, #tpu.memory_space<vmem>>, vector<104x128xf32>
    %1 = arith.truncf %0 : vector<104x128xf32> to vector<104x128xbf16>
    %c0_1 = arith.constant 0 : index
    %c0_2 = arith.constant 0 : index
    %2 = vector.load %arg2[%c0_1, %c0_2] : memref<128x64xbf16, #tpu.memory_space<vmem>>, vector<128x64xbf16>
    %cst = arith.constant dense<0.000000e+00> : vector<104x64xf32>
    %3 = tpu.matmul %1, %2, %cst {dimension_numbers = #tpu.dot_dimension_numbers<[1], [0], [0], [1], [0, 0, 1, 1], [], []>} : vector<104x128xbf16>, vector<128x64xbf16>, vector<104x64xf32> -> vector<104x64xf32>
    %c0_3 = arith.constant 0 : index
    %c0_4 = arith.constant 0 : index
    %4 = vector.load %arg3[%c0_3, %c0_4] : memref<1x64xf32, #tpu.memory_space<vmem>>, vector<1x64xf32>
    %5 = vector.broadcast %4 : vector<1x64xf32> to vector<104x64xf32>
    %6 = arith.addf %3, %5 : vector<104x64xf32>
    %cst_5 = arith.constant 0.000000e+00 : f32
    %7 = vector.broadcast %cst_5 : f32 to vector<104x64xf32>
    %8 = arith.maximumf %6, %7 : vector<104x64xf32>
    %9 = arith.truncf %8 : vector<104x64xf32> to vector<104x64xbf16>
    %10 = tpu.concatenate %1, %9 in 1 : vector<104x128xbf16>, vector<104x64xbf16> -> vector<104x192xbf16>
    %c0_6 = arith.constant 0 : index
    %c0_7 = arith.constant 0 : index
    %11 = vector.load %arg4[%c0_6, %c0_7] : memref<192x64xbf16, #tpu.memory_space<vmem>>, vector<192x64xbf16>
    %cst_8 = arith.constant dense<0.000000e+00> : vector<104x64xf32>
    %12 = tpu.matmul %10, %11, %cst_8 {dimension_numbers = #tpu.dot_dimension_numbers<[1], [0], [0], [1], [0, 0, 1, 1], [], []>} : vector<104x192xbf16>, vector<192x64xbf16>, vector<104x64xf32> -> vector<104x64xf32>
    %c0_9 = arith.constant 0 : index
    %c0_10 = arith.constant 0 : index
    %13 = vector.load %arg5[%c0_9, %c0_10] : memref<1x64xf32, #tpu.memory_space<vmem>>, vector<1x64xf32>
    %14 = vector.broadcast %13 : vector<1x64xf32> to vector<104x64xf32>
    %15 = arith.addf %12, %14 : vector<104x64xf32>
    %cst_11 = arith.constant 0.000000e+00 : f32
    %16 = vector.broadcast %cst_11 : f32 to vector<104x64xf32>
    %17 = arith.maximumf %15, %16 : vector<104x64xf32>
    %c0_12 = arith.constant 0 : index
    %c0_13 = arith.constant 0 : index
    %18 = vector.load %arg6[%c0_12, %c0_13] : memref<104x64xf32, #tpu.memory_space<vmem>>, vector<104x64xf32>
    tpu.vector_store %arg6[%c0_12, %c0_13], %17 {strides = array<i32>} : memref<104x64xf32, #tpu.memory_space<vmem>>, vector<104x64xf32>,
    return
  }
  func.func @transform_0(%arg0: i32) -> (i32, i32) {
    %c0_i32 = arith.constant 0 : i32
    %c0_i32_0 = arith.constant 0 : i32
    return %arg0, %c0_i32 : i32, i32
  }
  func.func @transform_1(%arg0: i32) -> (i32, i32) {
    %c0_i32 = arith.constant 0 : i32
    %c0_i32_0 = arith.constant 0 : i32
    %c0_i32_1 = arith.constant 0 : i32
    return %c0_i32, %c0_i32_0 : i32, i32
  }
  func.func @transform_2(%arg0: i32) -> (i32, i32) {
    %c0_i32 = arith.constant 0 : i32
    %c0_i32_0 = arith.constant 0 : i32
    %c0_i32_1 = arith.constant 0 : i32
    return %c0_i32, %c0_i32_0 : i32, i32
  }
  func.func @transform_3(%arg0: i32) -> (i32, i32) {
    %c0_i32 = arith.constant 0 : i32
    %c0_i32_0 = arith.constant 0 : i32
    %c0_i32_1 = arith.constant 0 : i32
    return %c0_i32, %c0_i32_0 : i32, i32
  }
  func.func @transform_4(%arg0: i32) -> (i32, i32) {
    %c0_i32 = arith.constant 0 : i32
    %c0_i32_0 = arith.constant 0 : i32
    %c0_i32_1 = arith.constant 0 : i32
    return %c0_i32, %c0_i32_0 : i32, i32
  }
  func.func @transform_5(%arg0: i32) -> (i32, i32) {
    %c0_i32 = arith.constant 0 : i32
    %c0_i32_0 = arith.constant 0 : i32
    return %arg0, %c0_i32 : i32, i32
  }
}

</mosaic_0001>

<bundles_post_ra>
// kernel: resnet_block_fc.1
= control target key start
LH: loop header
LB: loop body
LE: loop exit
PB: predicated region body
PF: predicated region fallthrough
CT: control target
= control target key end

     0   :  { %10 = vsyncpa [#allocation3], 0  ;;  %s1801_s0 = inlined_call_operand.hbm [shape: f32[200,128], index: 0, kind: input, shape index: {}]   ;;  %s1802_s1 = inlined_call_operand.vmem [shape: bf16[128,64], index: 1, kind: input, shape index: {}]   ;;  %s1803_s2 = inlined_call_operand.vmem [shape: f32[1,64], index: 2, kind: input, shape index: {}]   ;;  %s1804_s3 = inlined_call_operand.vmem [shape: bf16[192,64], index: 3, kind: input, shape index: {}]   ;;  %s1805_s4 = inlined_call_operand.vmem [shape: f32[1,64], index: 4, kind: input, shape index: {}]   ;;  %s1806_s5 = inlined_call_operand.vmem [shape: f32[200,64], index: 5, kind: output, shape index: {}]  }
   0x1   :  { %12 = vsyncpa [#allocation3 + $0x1], 0  ;;  %s1438_s18 = smov 0   ;;  %s1440_s19 = smov 0  }
   0x2   :  { %s1442_s20 = smov 0   ;;  %s1444_s21 = smov 0  }
   0x3 LB: > { %s1457_s22 = sadd.s32 4294967295, %s1371_s21   ;;  %s1460_s23 = sadd.s32 1, %s1371_s21   ;;  %s1371_s21 = sphi %s1444_s21, %s1818_s21   ;;  %s1367_s20 = sphi %s1442_s20, %s1817_s20   ;;  %s1363_s19 = sphi %s1440_s19, %s1816_s19   ;;  %s1359_s18 = sphi %s1438_s18, %s1815_s18  }
   0x4   : > { %s22_s24 = ssub.s32 %s1371_s21, %s1460_s23  ;;  %s25_s25 = sadd.s32 1, %s1367_s20 }
   0x5   : > { %p23_p0 = scmp.eq.s32.totalorder %s22_s24, 0  ;;  %p32_p1 = scmp.ne.s32.totalorder %s1367_s20, %s1363_s19 }
   0x6   : > { %p33_p2 = scmp.eq.s32.totalorder %s1371_s21, 0  ;;  %p38_p3 = scmp.ne.s32.totalorder %s1363_s19, %s1359_s18 }
   0x7   : > { %s1470_s26 = scalar_select %p23_p0, %s1367_s20, %s25_s25  }
   0x8   : > { %p34_p4 = por %p33_p2, %p32_p1  ;;  %p39_p5 = scmp.eq.s32.totalorder %s1457_s22, 0 }
   0x9   : > { %p146_p6 = scmp.eq.s32.totalorder %s1457_s22, 1  ;;  %p1008_p9 = scmp.ge.s32.totalorder %s1371_s21, 2 }
   0xa   : > { %p1474_p7 = por %p39_p5, %p38_p3 }
   0xb   : > { %p1478_p8 = por %p146_p6, %p32_p1  ;;  %180 = sbr.rel (%p1008_p9) target bundleno = 54 (0x36), region = 32 }
  0x10   : > { %183 = sbr.rel (!%p34_p4) target bundleno = 54 (0x36), region = 36  ;;  %s184_s29 = sand.u32 (%p34_p4), 1, %s1367_s20  }
  0x11   : > { %s189_s30 = smul.u32 (%p34_p4), 13, %s1371_s21  ;;  %s1488_s11 = scalar_lea.sflag (%p34_p4), [#allocation3], %s184_s29 }
  0x12   : > { %s1156_s6 = smul.u32 (%p34_p4), 104, %s184_s29 }
  0x13   : > { %s190_s7 = ssub.s32 (%p34_p4), 25, %s189_s30 }
  0x14   : > { %p191_p10 = scmp.lt.s32.totalorder (%p34_p4), %s190_s7, 13  ;;  %s188_s12 = scalar_lea.vmem (%p34_p4), [#allocation2], %s1156_s6 }
  0x16   : > { %s1820_s7 = smov (!%p191_p10, %s190_s7), 13 }
  0x17   : > { %s1009_s8 = sshll.u32 %s1820_s7, 3 }
  0x18   : > { %s194_s9 = ssub.s32 104, %s1009_s8 }
  0x19   : > { %s195_s10 = sshll.u32 %s194_s9, 4 }
  0x1a   : > { %196 = vsyncadd %s1488_s11, %s195_s10  ;;  %p1491_p11 = scmp.ne.s32.totalorder %s1009_s8, 0  ;;  %s1114_s14 = smul.u32 104, %s1371_s21 }
  0x1b   : > { %s1496_s15 = sshll.u32 %s188_s12, 4  ;;  %s1013_s16 = sshll.u32 %s1820_s7, 7  ;;  %s204_s15 = int_to_ptr.vmem [resolvable:$true] %s1496_s15 }
  0x1c   : > { %s199_s24 = scalar_lea.hbm %s1801_s0, %s1114_s14  ;;  %s1268_s30 = sshrl.u32 %s1013_s16, 4 }
  0x1d   : > { %s201_s25 = sshll.u32 %s199_s24, 4  ;;  %s1277_s10 = scalar_lea.hbm %s1801_s0, 200  ;;  %s1503_s25 = int_to_ptr.hbm [resolvable:$true] %s201_s25 }
  0x1e   : > { %s1266_s29 = sshra.s32 %s1503_s25, 4  ;;  %s1267_s29 = int_to_ptr.hbm [resolvable:$true] %s1266_s29 }
  0x1f   : > { %s1273_s6 = scalar_lea.hbm %s1267_s29, %s1268_s30  ;;  %p1278_p1 = scmp.lt.s32.totalorder %s1267_s29, %s1801_s0 }
  0x20   : > { %p1274_p12 = scmp.ne.s32.totalorder %s1267_s29, %s1273_s6  ;;  %p1279_p2 = scmp.lt.s32.totalorder %s1277_s10, %s1273_s6 }
  0x22   : > { %p1275_p13 = pnand %p1274_p12, %p1491_p11  ;;  %p1280_p3 = por %p1279_p2, %p1278_p1 }
  0x24   : > { %p1276_p0 = pneg %p1275_p13 }
  0x26   : > { %p1281_p4 = pnand %p1280_p3, %p1276_p0 }
  0x28   : > { %1284 = shalt.err (!%p1281_p4)
}
  0x29   : > { %s1285_s17 = sshra.s32 %s204_s15, 4  ;;  %s1405_s24 = smov [#allocation2]   ;;  %s1286_s17 = int_to_ptr.vmem [resolvable:$true] %s1285_s17 }
  0x2a   : > { %s1292_s18 = scalar_lea.vmem %s1286_s17, %s1268_s30  ;;  %s1296_s8 = scalar_lea.vmem %s1405_s24, 208 }
  0x2b   : > { %p1293_p5 = scmp.ne.s32.totalorder %s1286_s17, %s1292_s18  ;;  %p1298_p10 = scmp.lt.s32.totalorder %s1296_s8, %s1292_s18 }
  0x2d   : > { %p1294_p6 = pnand %p1293_p5, %p1491_p11 }
  0x2f   : > { %p1295_p9 = pneg %p1294_p6 }
  0x31   : > { %p1300_p12 = pnand %p1298_p10, %p1295_p9 }
  0x33   : > { %1303 = shalt.err (!%p1300_p12)
}
  0x34   : > { %s1406_s29 = smov 128   ;;  %s1407_s6 = smov 8  }
  0x35   : > { %209 = dma.hbm_to_vmem [thread:$0]  (%p1491_p11), %s1503_s25, %s1013_s16, %s204_s15, %s1488_s11, %s1406_s29, %s1406_s29, %s1407_s6  }
  0x36 PF: > { %p1014_p13 = scmp.ge.s32.totalorder %s1371_s21, 1  ;;  %p211_p0 = scmp.lt.s32.totalorder %s1371_s21, 3 }
  0x38   : > { %p212_p1 = pnand %p1014_p13, %p211_p0 }
  0x39   : > { %s217_s30 = sand.u32 (!%p212_p1), 1, %s1363_s19  }
  0x3a   : > { %215 = sbr.rel (%p212_p1) target bundleno = 525 (0x20d), region = 40  ;;  %s218_s10 = scalar_lea.sflag (!%p212_p1), [#allocation3], %s217_s30 }
  0x3b   : > { %s1531_s9 = smul.u32 (!%p212_p1), 104, %s217_s30 }
  0x3d   : > { %s1534_s12 = scalar_lea.vmem (!%p212_p1), [#allocation2], %s1531_s9 }
  0x3f   : > { %1354 = dma.done.wait (%p1474_p7), %s218_s10, 1664  }
  0x40   : > { %1356 = vsyncadd (%p1474_p7), %s218_s10, 4294965632  ;;  %v1122_v0 = vld [vmem:[%s1802_s1 + $0x38] sm:$0xff]  ;;  %v1121_v1 = vld [vmem:[%s1802_s1 + $0x30] sm:$0xff]  ;;  %vm595_vm0 = vcmask 523264   ;;  %s1665_s14 = scalar_lea.vmem [#allocation4], %s1531_s9   ;;  %s736_s9 = smul.u32 (%p1478_p8), 13, %s1457_s22 }
  0x41   : > { %393 = vmatpush.bf16.msra.mxu0 %v1122_v0  ;;  %1136 = vmatpush.bf16.msra.mxu3 %v1122_v0  ;;  %v1120_v2 = vld [vmem:[%s1802_s1 + $0x28] sm:$0xff]  ;;  %v1119_v3 = vld [vmem:[%s1802_s1 + $0x20] sm:$0xff]  ;;  %v1118_v4 = vld [vmem:[%s1802_s1 + $0x18] sm:$0xff]  ;;  %s1135_s17 = smul.u32 (%p1478_p8), 104, %s1457_s22 }
  0x42   : > { %v1117_v5 = vld [vmem:[%s1802_s1 + $0x10] sm:$0xff]  ;;  %v259_v6 = vld [vmem:[%s1534_s12] sm:$0xff]  ;;  %v262_v16 = vld [vmem:[%s1534_s12 + $0x18] sm:$0xff]  ;;  %s737_s18 = ssub.s32 (%p1478_p8), 25, %s736_s9 }
  0x43   : > { %v260_v7 = vld [vmem:[%s1534_s12 + $0x8] sm:$0xff]  ;;  %v272_v8 = vpack.c.bf16 %v259_v6, %v259_v6  ;;  %v1115_v13 = vld [vmem:[%s1802_s1] sm:$0xff]  ;;  %v261_v15 = vld [vmem:[%s1534_s12 + $0x10] sm:$0xff]  ;;  %v275_v18 = vpack.c.bf16 %v262_v16, %v262_v16  ;;  %p738_p7 = scmp.lt.s32.totalorder (%p1478_p8), %s737_s18, 13  ;;  %s1712_s29 = scalar_lea.vmem (%p1478_p8), %s1806_s5, %s1135_s17  }
  0x44   : > { %v273_v9 = vpack.c.bf16 %v260_v7, %v260_v7  ;;  %v1116_v10 = vld [vmem:[%s1802_s1 + $0x8] sm:$0xff]  ;;  %v274_v17 = vpack.c.bf16 %v261_v15, %v261_v15  ;;  %v269_v22 = vld [vmem:[%s1534_s12 + $0x50] sm:$0xff]  ;;  %v270_v23 = vld [vmem:[%s1534_s12 + $0x58] sm:$0xff] }
  0x45   : > { %394 = vmatpush.bf16.msra.mxu0 %v1121_v1  ;;  %1137 = vmatpush.bf16.msra.mxu3 %v1121_v1  ;;  %v318_v11 = vunpack.c.l.b16 %v272_v8  ;;  %v321_v20 = vunpack.c.l.b16 %v275_v18  ;;  %v263_v24 = vld [vmem:[%s1534_s12 + $0x20] sm:$0xff]  ;;  %v264_v25 = vld [vmem:[%s1534_s12 + $0x28] sm:$0xff]  ;;  %v282_v26 = vpack.c.bf16 %v269_v22, %v269_v22  ;;  %v283_v27 = vpack.c.bf16 %v270_v23, %v270_v23  ;;  %v1130_v37 = vld [vmem:[%s1804_s3 + $0x38] sm:$0xff] }
  0x46   : > { %v319_v12 = vunpack.c.l.b16 %v273_v9  ;;  %v320_v19 = vunpack.c.l.b16 %v274_v17  ;;  %v276_v30 = vpack.c.bf16 %v263_v24, %v263_v24  ;;  %v277_v31 = vpack.c.bf16 %v264_v25, %v264_v25  ;;  %v271_v36 = vld [vmem:[%s1534_s12 + $0x60] sm:$0xff]  ;;  %v265_v38 = vld [vmem:[%s1534_s12 + $0x30] sm:$0xff]  ;;  %v266_v39 = vld [vmem:[%s1534_s12 + $0x38] sm:$0xff]  ;;  %617 = vmatpush.bf16.msra.mxu1 %v1130_v37 }
  0x47   : > { %v328_v28 = vunpack.c.l.b16 %v282_v26  ;;  %v329_v29 = vunpack.c.l.b16 %v283_v27  ;;  %v284_v40 = vpack.c.bf16 %v271_v36, %v271_v36  ;;  %v1129_v41 = vld [vmem:[%s1804_s3 + $0x30] sm:$0xff]  ;;  %v278_v43 = vpack.c.bf16 %v265_v38, %v265_v38  ;;  %v267_v49 = vld [vmem:[%s1534_s12 + $0x40] sm:$0xff]  ;;  %v1134_v58 = vld [vmem:[%s1804_s3 + $0x58] sm:$0xff] }
  0x48   : > { %v1566_v14 = vpack.c.b16 %v319_v12, %v318_v11  ;;  %v1571_v21 = vpack.c.b16 %v321_v20, %v320_v19  ;;  %v322_v33 = vunpack.c.l.b16 %v276_v30  ;;  %v323_v34 = vunpack.c.l.b16 %v277_v31  ;;  %v268_v50 = vld [vmem:[%s1534_s12 + $0x48] sm:$0xff]  ;;  %v1127_v57 = vld [vmem:[%s1804_s3 + $0x20] sm:$0xff]  ;;  %664 = vmatpush.bf16.msra.mxu2 %v1134_v58  ;;  %v1126_v59 = vld [vmem:[%s1804_s3 + $0x18] sm:$0xff] }
  0x49   : > { %395 = vmatpush.bf16.msra.mxu0 %v1120_v2  ;;  %1138 = vmatpush.bf16.msra.mxu3 %v1120_v2  ;;  %v336_v32 = vpack.c.b16 %v329_v29, %v328_v28  ;;  %v330_v42 = vunpack.c.l.b16 %v284_v40  ;;  %v279_v44 = vpack.c.bf16 %v266_v39, %v266_v39  ;;  %v324_v46 = vunpack.c.l.b16 %v278_v43  ;;  %v1128_v56 = vld [vmem:[%s1804_s3 + $0x28] sm:$0xff]  ;;  %v1133_v60 = vld [vmem:[%s1804_s3 + $0x50] sm:$0xff]  ;;  %v1131_v0 = vld [vmem:[%s1804_s3 + $0x40] sm:$0xff] }
  0x4a   : > { %v1578_v35 = vpack.c.b16 %v323_v34, %v322_v33  ;;  %618 = vmatpush.bf16.msra.mxu1 %v1129_v41  ;;  %v280_v51 = vpack.c.bf16 %v267_v49, %v267_v49  ;;  %v281_v52 = vpack.c.bf16 %v268_v50, %v268_v50  ;;  %v1125_v61 = vld [vmem:[%s1804_s3 + $0x10] sm:$0xff]  ;;  %v1132_v62 = vld [vmem:[%s1804_s3 + $0x48] sm:$0xff]  ;;  %v1123_v1 = vld [vmem:[%s1804_s3] sm:$0xff] }
  0x4b   : > { %v337_v45 = vpack.c.b16 %v330_v42, %v330_v42  ;;  %v325_v47 = vunpack.c.l.b16 %v279_v44  ;;  %v1124_v63 = vld [vmem:[%s1804_s3 + $0x8] sm:$0xff]  ;;  %v1632_v2 = vld [vmem:[%s1803_s2] ss:$0 sm:$0xff] }
  0x4c   : > { %v326_v53 = vunpack.c.l.b16 %v280_v51  ;;  %v327_v54 = vunpack.c.l.b16 %v281_v52  ;;  %665 = vmatpush.bf16.msra.mxu2 %v1133_v60 }
  0x4d   : > { %396 = vmatpush.bf16.msra.mxu0 %v1119_v3  ;;  %1139 = vmatpush.bf16.msra.mxu3 %v1119_v3  ;;  %v1590_v48 = vpack.c.b16 %v325_v47, %v324_v46 }
  0x4e   : > { %v1595_v55 = vpack.c.b16 %v327_v54, %v326_v53  ;;  %619 = vmatpush.bf16.msra.mxu1 %v1128_v56 }
  0x50   : > { %666 = vmatpush.bf16.msra.mxu2 %v1132_v62 }
  0x51   : > { %397 = vmatpush.bf16.msra.mxu0 %v1118_v4  ;;  %1140 = vmatpush.bf16.msra.mxu3 %v1118_v4 }
  0x52   : > { %620 = vmatpush.bf16.msra.mxu1 %v1127_v57 }
  0x54   : > { %667 = vmatpush.bf16.msra.mxu2 %v1131_v0 }
  0x55   : > { %398 = vmatpush.bf16.msra.mxu0 %v1117_v5  ;;  %1141 = vmatpush.bf16.msra.mxu3 %v1117_v5 }
  0x56   : > { %621 = vmatpush.bf16.msra.mxu1 %v1126_v59 }
  0x59   : > { %399 = vmatpush.bf16.msra.mxu0 %v1116_v10  ;;  %1142 = vmatpush.bf16.msra.mxu3 %v1116_v10 }
  0x5a   : > { %622 = vmatpush.bf16.msra.mxu1 %v1125_v61 }
  0x5d   : > { %400 = vmatpush.bf16.msra.mxu0 %v1115_v13  ;;  %1143 = vmatpush.bf16.msra.mxu3 %v1115_v13 }
  0x5e   : > { %623 = vmatpush.bf16.msra.mxu1 %v1124_v63 }
  0x60   : > { %401 = vmatmul.bf16.vlgmr.msra.gmra.mxu0 %v1566_v14  ;;  %426 = vmatmul.bf16.vlgmr.msra.gmra.mxu3 %v336_v32 }
  0x61   : > { %1144 = vmatpush.bf16.msrb.mxu3 %v1130_v37 }
  0x62   : > { %624 = vmatpush.bf16.msra.mxu1 %v1123_v1 }
  0x65   : > { %1145 = vmatpush.bf16.msrb.mxu3 %v1129_v41  ;;  %625 = vmatmul.bf16.vlgmr.msra.gmra.mxu1 %v1566_v14 }
  0x69   : > { %1146 = vmatpush.bf16.msrb.mxu3 %v1128_v56 }
  0x6d   : > { %1147 = vmatpush.bf16.msrb.mxu3 %v1127_v57 }
  0x70   : > { %406 = vmatmul.bf16.gmra.mxu0 %v1571_v21  ;;  %431 = vmatmul.bf16.gmra.mxu3 %v337_v45 }
  0x71   : > { %1148 = vmatpush.bf16.msrb.mxu3 %v1126_v59 }
  0x75   : > { %1149 = vmatpush.bf16.msrb.mxu3 %v1125_v61  ;;  %630 = vmatmul.bf16.gmra.mxu1 %v1571_v21 }
  0x79   : > { %1150 = vmatpush.bf16.msrb.mxu3 %v1124_v63 }
  0x7d   : > { %1151 = vmatpush.bf16.msrb.mxu3 %v1123_v1 }
  0x80   : > { %411 = vmatmul.bf16.gmra.mxu0 %v1578_v35  ;;  %650 = vmatmul.bf16.vlgmr.msrb.gmra.mxu3 %v336_v32 }
  0x81   : > { %1152 = vmatpush.bf16.msra.mxu3 %v1134_v58 }
  0x85   : > { %1153 = vmatpush.bf16.msra.mxu3 %v1133_v60  ;;  %635 = vmatmul.bf16.gmra.mxu1 %v1578_v35 }
  0x89   : > { %1154 = vmatpush.bf16.msra.mxu3 %v1132_v62 }
  0x8d   : > { %1155 = vmatpush.bf16.msra.mxu3 %v1131_v0 }
  0x90   : > { %416 = vmatmul.bf16.gmra.mxu0 %v1590_v48  ;;  %655 = vmatmul.bf16.gmra.mxu3 %v337_v45 }
  0x95   : > { %640 = vmatmul.bf16.gmra.mxu1 %v1590_v48 }
  0xa0   : > { %421 = vmatmul.bf16.gmra.mxu0 %v1595_v55 }
  0xa5   : > { %645 = vmatmul.bf16.gmra.mxu1 %v1595_v55 }
  0xdd   : > { %v402_v3 = vpop.f32.mrf.mxu0 }
  0xde   : > { %v403_v4 = vadd.f32 %v1632_v2, %v402_v3 }
  0xe0   : > { %v436_v5 = vmax.f32 %v403_v4, 0.0 }
  0xe2   : > { %v449_v8 = vpack.c.bf16 %v436_v5, %v436_v5 }
  0xe3   : > { %v427_v24 = vpop.f32.mrf.mxu3 }
  0xe4   : > { %v475_v11 = vunpack.c.l.b16 %v449_v8  ;;  %v428_v3 = vadd.f32 %v1632_v2, %v427_v24 }
  0xe5   : > { %v404_v6 = vpop.f32.mrf.mxu0 }
  0xe6   : > { %v405_v7 = vadd.f32 %v1632_v2, %v404_v6  ;;  %v446_v6 = vmax.f32 %v428_v3, 0.0 }
  0xe8   : > { %v437_v9 = vmax.f32 %v405_v7, 0.0  ;;  %v459_v8 = vpack.c.bf16 %v446_v6, %v446_v6 }
  0xea   : > { %v450_v10 = vpack.c.bf16 %v437_v9, %v437_v9 }
  0xeb   : > { %v429_v29 = vpop.f32.mrf.mxu3 }
  0xec   : > { %v476_v12 = vunpack.c.l.b16 %v450_v10  ;;  %v430_v4 = vadd.f32 %v1632_v2, %v429_v29  ;;  %v485_v10 = vunpack.c.l.b16 %v459_v8 }
  0xed   : > { %v407_v13 = vpop.f32.mrf.mxu0 }
  0xee   : > { %v488_v14 = vpack.c.b16 %v476_v12, %v475_v11  ;;  %v408_v15 = vadd.f32 %v1632_v2, %v407_v13  ;;  %v447_v7 = vmax.f32 %v430_v4, 0.0  ;;  %v626_v13 = vpop.f32.mrf.mxu1 }
  0xf0   : > { %1095 = vmatmul.msk.bf16.vlgmr.msra.gmra.mxu2 %vm595_vm0, %v488_v14  ;;  %v438_v16 = vmax.f32 %v408_v15, 0.0  ;;  %v460_v9 = vpack.c.bf16 %v447_v7, %v447_v7  ;;  %v1661_v15 = vld [vmem:[%s1805_s4] ss:$0 sm:$0xff] }
  0xf2   : > { %v451_v19 = vpack.c.bf16 %v438_v16, %v438_v16  ;;  %v486_v11 = vunpack.c.l.b16 %v460_v9  ;;  %v627_v16 = vadd.f32 %v1661_v15, %v626_v13 }
  0xf3   : > { %v432_v37 = vpop.f32.mrf.mxu3 }
  0xf4   : > { %v477_v22 = vunpack.c.l.b16 %v451_v19  ;;  %v433_v39 = vadd.f32 %v1632_v2, %v432_v37  ;;  %v493_v12 = vpack.c.b16 %v486_v11, %v485_v10 }
  0xf5   : > { %v409_v17 = vpop.f32.mrf.mxu0 }
  0xf6   : > { %v410_v18 = vadd.f32 %v1632_v2, %v409_v17  ;;  %v448_v41 = vmax.f32 %v433_v39, 0.0  ;;  %v628_v14 = vpop.f32.mrf.mxu1 }
  0xf8   : > { %v439_v20 = vmax.f32 %v410_v18, 0.0  ;;  %v461_v43 = vpack.c.bf16 %v448_v41, %v448_v41 }
  0xfa   : > { %v452_v21 = vpack.c.bf16 %v439_v20, %v439_v20  ;;  %v487_v44 = vunpack.c.l.b16 %v461_v43  ;;  %v629_v20 = vadd.f32 %v1661_v15, %v628_v14 }
  0xfb   : > { %v434_v46 = vpop.f32.mrf.mxu3 }
  0xfc   : > { %v478_v23 = vunpack.c.l.b16 %v452_v21  ;;  %v494_v48 = vpack.c.b16 %v487_v44, %v487_v44 }
  0xfd   : > { %v412_v25 = vpop.f32.mrf.mxu0 }
  0xfe   : > { %v489_v26 = vpack.c.b16 %v478_v23, %v477_v22  ;;  %v413_v27 = vadd.f32 %v1632_v2, %v412_v25  ;;  %1101 = vmatmul.msk.bf16.vlgmr.msra.gmra.mxu3 %vm595_vm0, %v494_v48 }
 0x100   : > { %1096 = vmatmul.msk.bf16.gmra.mxu2 %vm595_vm0, %v489_v26  ;;  %v440_v28 = vmax.f32 %v413_v27, 0.0 }
 0x102   : > { %v453_v32 = vpack.c.bf16 %v440_v28, %v440_v28 }
 0x103   : > { %v651_v21 = vpop.f32.mrf.mxu3 }
 0x104   : > { %v479_v35 = vunpack.c.l.b16 %v453_v32  ;;  %v652_v9 = vadd.f32 %v1661_v15, %v651_v21 }
 0x105   : > { %v414_v30 = vpop.f32.mrf.mxu0 }
 0x106   : > { %v415_v31 = vadd.f32 %v1632_v2, %v414_v30 }
 0x108   : > { %v441_v33 = vmax.f32 %v415_v31, 0.0 }
 0x10a   : > { %v454_v34 = vpack.c.bf16 %v441_v33, %v441_v33 }
 0x10b   : > { %v653_v27 = vpop.f32.mrf.mxu3 }
 0x10c   : > { %v480_v36 = vunpack.c.l.b16 %v454_v34  ;;  %v654_v13 = vadd.f32 %v1661_v15, %v653_v27 }
 0x10d   : > { %v417_v38 = vpop.f32.mrf.mxu0 }
 0x10e   : > { %v490_v40 = vpack.c.b16 %v480_v36, %v479_v35  ;;  %v418_v42 = vadd.f32 %v1632_v2, %v417_v38 }
 0x110   : > { %1097 = vmatmul.msk.bf16.gmra.mxu2 %vm595_vm0, %v490_v40  ;;  %v442_v45 = vmax.f32 %v418_v42, 0.0 }
 0x112   : > { %v455_v50 = vpack.c.bf16 %v442_v45, %v442_v45 }
 0x113   : > { %v656_v33 = vpop.f32.mrf.mxu3 }
 0x114   : > { %v481_v53 = vunpack.c.l.b16 %v455_v50  ;;  %v657_v44 = vadd.f32 %v1661_v15, %v656_v33 }
 0x115   : > { %v419_v47 = vpop.f32.mrf.mxu0 }
 0x116   : > { %v420_v49 = vadd.f32 %v1632_v2, %v419_v47 }
 0x118   : > { %v443_v51 = vmax.f32 %v420_v49, 0.0 }
 0x11a   : > { %v456_v52 = vpack.c.bf16 %v443_v51, %v443_v51 }
 0x11b   : > { %v658_v39 = vpop.f32.mrf.mxu3 }
 0x11c   : > { %v482_v54 = vunpack.c.l.b16 %v456_v52 }
 0x11d   : > { %v422_v56 = vpop.f32.mrf.mxu0 }
 0x11e   : > { %v491_v57 = vpack.c.b16 %v482_v54, %v481_v53  ;;  %v423_v58 = vadd.f32 %v1632_v2, %v422_v56 }
 0x120   : > { %1098 = vmatmul.msk.bf16.gmra.mxu2 %vm595_vm0, %v491_v57  ;;  %v444_v59 = vmax.f32 %v423_v58, 0.0 }
 0x122   : > { %v457_v61 = vpack.c.bf16 %v444_v59, %v444_v59 }
 0x124   : > { %v483_v0 = vunpack.c.l.b16 %v457_v61 }
 0x125   : > { %v424_v55 = vpop.f32.mrf.mxu0 }
 0x126   : > { %v425_v60 = vadd.f32 %v1632_v2, %v424_v55  ;;  %v631_v2 = vpop.f32.mrf.mxu1 }
 0x127   : > { %v632_v26 = vadd.f32 %v1661_v15, %v631_v2 }
 0x128   : > { %v445_v62 = vmax.f32 %v425_v60, 0.0 }
 0x12a   : > { %v458_v63 = vpack.c.bf16 %v445_v62, %v445_v62 }
 0x12c   : > { %v484_v1 = vunpack.c.l.b16 %v458_v63 }
 0x12e   : > { %v492_v5 = vpack.c.b16 %v484_v1, %v483_v0  ;;  %v633_v22 = vpop.f32.mrf.mxu1 }
 0x12f   : > { %v634_v32 = vadd.f32 %v1661_v15, %v633_v22 }
 0x130   : > { %1099 = vmatmul.msk.bf16.gmra.mxu2 %vm595_vm0, %v492_v5 }
 0x136   : > { %v636_v29 = vpop.f32.mrf.mxu1 }
 0x137   : > { %v637_v38 = vadd.f32 %v1661_v15, %v636_v29 }
 0x13e   : > { %v638_v36 = vpop.f32.mrf.mxu1 }
 0x13f   : > { %v639_v45 = vadd.f32 %v1661_v15, %v638_v36 }
 0x140   : > { %1100 = vmatmul.msk.bf16.gmra.mxu2 %vm595_vm0, %v493_v12 }
 0x146   : > { %v641_v43 = vpop.f32.mrf.mxu1 }
 0x147   : > { %v642_v52 = vadd.f32 %v1661_v15, %v641_v43 }
 0x14e   : > { %v643_v53 = vpop.f32.mrf.mxu1 }
 0x14f   : > { %v644_v59 = vadd.f32 %v1661_v15, %v643_v53 }
 0x156   : > { %v646_v60 = vpop.f32.mrf.mxu1 }
 0x157   : > { %v647_v63 = vadd.f32 %v1661_v15, %v646_v60 }
 0x15e   : > { %v648_v3 = vpop.f32.mrf.mxu1 }
 0x15f   : > { %v649_v5 = vadd.f32 %v1661_v15, %v648_v3 }
 0x173   : > { %v669_v17 = vpop.f32.mrf.mxu2 }
 0x174   : > { %v670_v18 = vadd.f32 %v669_v17, %v627_v16 }
 0x176   : > { %v703_v19 = vmax.f32 %v670_v18, 0.0 }
 0x178   : > { %716 = vst.msk [vmem:[%s1665_s14] sm:$0xff] %vm595_vm0, %v703_v19 }
 0x17b   : > { %v671_v23 = vpop.f32.mrf.mxu2 }
 0x17c   : > { %v672_v24 = vadd.f32 %v671_v23, %v629_v20 }
 0x17e   : > { %v704_v25 = vmax.f32 %v672_v24, 0.0 }
 0x180   : > { %717 = vst.msk [vmem:[%s1665_s14 + $0x8] sm:$0xff] %vm595_vm0, %v704_v25 }
 0x181   : > { %v699_v46 = vpop.f32.mrf.mxu3 }
 0x182   : > { %v700_v48 = vadd.f32 %v699_v46, %v657_v44 }
 0x183   : > { %v674_v28 = vpop.f32.mrf.mxu2 }
 0x184   : > { %v675_v30 = vadd.f32 %v674_v28, %v632_v26  ;;  %v715_v50 = vmax.f32 %v700_v48, 0.0 }
 0x186   : > { %v705_v31 = vmax.f32 %v675_v30, 0.0  ;;  %728 = vst.msk [vmem:[%s1665_s14 + $0x60] sm:$0xff] %vm595_vm0, %v715_v50 }
 0x188   : > { %718 = vst.msk [vmem:[%s1665_s14 + $0x10] sm:$0xff] %vm595_vm0, %v705_v31 }
 0x189   : > { %v701_v54 = vpop.f32.mrf.mxu3 }
 0x18b   : > { %v676_v34 = vpop.f32.mrf.mxu2 }
 0x18c   : > { %v677_v35 = vadd.f32 %v676_v34, %v634_v32 }
 0x18e   : > { %v706_v37 = vmax.f32 %v677_v35, 0.0 }
 0x190   : > { %719 = vst.msk [vmem:[%s1665_s14 + $0x18] sm:$0xff] %vm595_vm0, %v706_v37 }
 0x193   : > { %v679_v40 = vpop.f32.mrf.mxu2 }
 0x194   : > { %v680_v41 = vadd.f32 %v679_v40, %v637_v38 }
 0x196   : > { %v707_v42 = vmax.f32 %v680_v41, 0.0 }
 0x198   : > { %720 = vst.msk [vmem:[%s1665_s14 + $0x20] sm:$0xff] %vm595_vm0, %v707_v42 }
 0x19b   : > { %v681_v47 = vpop.f32.mrf.mxu2 }
 0x19c   : > { %v682_v49 = vadd.f32 %v681_v47, %v639_v45 }
 0x19e   : > { %v708_v51 = vmax.f32 %v682_v49, 0.0 }
 0x1a0   : > { %721 = vst.msk [vmem:[%s1665_s14 + $0x28] sm:$0xff] %vm595_vm0, %v708_v51 }
 0x1a3   : > { %v684_v56 = vpop.f32.mrf.mxu2 }
 0x1a4   : > { %v685_v57 = vadd.f32 %v684_v56, %v642_v52 }
 0x1a6   : > { %v709_v58 = vmax.f32 %v685_v57, 0.0 }
 0x1a8   : > { %722 = vst.msk [vmem:[%s1665_s14 + $0x30] sm:$0xff] %vm595_vm0, %v709_v58 }
 0x1ab   : > { %v686_v55 = vpop.f32.mrf.mxu2 }
 0x1ac   : > { %v687_v61 = vadd.f32 %v686_v55, %v644_v59 }
 0x1ae   : > { %v710_v62 = vmax.f32 %v687_v61, 0.0 }
 0x1b0   : > { %723 = vst.msk [vmem:[%s1665_s14 + $0x38] sm:$0xff] %vm595_vm0, %v710_v62 }
 0x1b3   : > { %v689_v0 = vpop.f32.mrf.mxu2 }
 0x1b4   : > { %v690_v1 = vadd.f32 %v689_v0, %v647_v63 }
 0x1b6   : > { %v711_v4 = vmax.f32 %v690_v1, 0.0 }
 0x1b8   : > { %724 = vst.msk [vmem:[%s1665_s14 + $0x40] sm:$0xff] %vm595_vm0, %v711_v4 }
 0x1bb   : > { %v691_v6 = vpop.f32.mrf.mxu2 }
 0x1bc   : > { %v692_v7 = vadd.f32 %v691_v6, %v649_v5 }
 0x1be   : > { %v712_v8 = vmax.f32 %v692_v7, 0.0 }
 0x1c0   : > { %725 = vst.msk [vmem:[%s1665_s14 + $0x48] sm:$0xff] %vm595_vm0, %v712_v8 }
 0x1c3   : > { %v694_v10 = vpop.f32.mrf.mxu2 }
 0x1c4   : > { %v695_v11 = vadd.f32 %v694_v10, %v652_v9 }
 0x1c6   : > { %v713_v12 = vmax.f32 %v695_v11, 0.0 }
 0x1c8   : > { %726 = vst.msk [vmem:[%s1665_s14 + $0x50] sm:$0xff] %vm595_vm0, %v713_v12 }
 0x1cb   : > { %v696_v14 = vpop.f32.mrf.mxu2 }
 0x1cc   : > { %v697_v2 = vadd.f32 %v696_v14, %v654_v13  ;;  %735 = sbr.rel (!%p1478_p8) target bundleno = 525 (0x20d), region = 48 }
 0x1ce   : > { %v714_v16 = vmax.f32 %v697_v2, 0.0 }
 0x1d0   : > { %727 = vst.msk [vmem:[%s1665_s14 + $0x58] sm:$0xff] %vm595_vm0, %v714_v16 }
 0x1d1   : > { %s1822_s18 = smov (!%p738_p7, %s737_s18), 13 }
 0x1d2   : > { %s1102_s6 = sshll.u32 %s1822_s18, 3 }
 0x1d3   : > { %p1105_p11 = scmp.eq.s32.totalorder %s1102_s6, 0 }
 0x1d4   : > { %1260 = sdivrem.u32 (!%p1105_p11), %s1822_s18, 13 }
 0x1d5   : > { %746 = sbr.rel (%p1105_p11) target bundleno = 525 (0x20d), region = 52 }
 0x1dd   : > { %s1718_s28 = spop.drf %1260 }
 0x1de   : > { %s1262_s30 = spop.drf %1260  ;;  %p1106_p8 = scmp.le.s32.totalorder %s1718_s28, 0 }
 0x1df   : > { %s1810_s22 = smov (!%p1106_p8), %s1712_s29  ;;  %s1811_s10 = smov (!%p1106_p8), %s1665_s14 }
 0x1e0   : > { %959 = sbr.rel (%p1106_p8) target bundleno = 499 (0x1f3), region = 134  ;;  %s1727_s7 = smov (!%p1106_p8), 0  }
 0x1e1   : > { %s1729_s11 = smov (!%p1106_p8), 0  }
 0x1e5 LB: >> { %v835_v15 = vld [vmem:[%s1379_s10] sm:$0xff]  ;;  %v837_v17 = vld [vmem:[%s1379_s10 + $0x8] sm:$0xff]  ;;  %v839_v18 = vld [vmem:[%s1379_s10 + $0x10] sm:$0xff]  ;;  %s861_s21 = sadd.s32 1, %s1383_s7  ;;  %s829_s11 = sadd.s32 1, %s1387_s11   ;;  %s1387_s11 = sphi %s1729_s11, %s829_s11   ;;  %s1383_s7 = sphi %s1727_s7, %s1814_s7   ;;  %s1379_s10 = sphi %s1811_s10, %s1813_s10   ;;  %s1375_s22 = sphi %s1810_s22, %s1812_s22  }
 0x1e6   : >> { %836 = vst [vmem:[%s1375_s22] sm:$0xff] %v835_v15  ;;  %v841_v19 = vld [vmem:[%s1379_s10 + $0x18] sm:$0xff]  ;;  %p862_p2 = scmp.ge.s32.totalorder %s861_s21, %s1718_s28  ;;  %v843_v20 = vld [vmem:[%s1379_s10 + $0x20] sm:$0xff]  ;;  %v845_v21 = vld [vmem:[%s1379_s10 + $0x28] sm:$0xff]  ;;  %p828_p3 = scmp.ge.s32.totalorder %s829_s11, %s1718_s28 }
 0x1e7   : >> { %838 = vst [vmem:[%s1375_s22 + $0x8] sm:$0xff] %v837_v17  ;;  %v847_v22 = vld [vmem:[%s1379_s10 + $0x30] sm:$0xff]  ;;  %v849_v23 = vld [vmem:[%s1379_s10 + $0x38] sm:$0xff]  ;;  %v851_v24 = vld [vmem:[%s1379_s10 + $0x40] sm:$0xff] }
 0x1e8   : >> { %840 = vst [vmem:[%s1375_s22 + $0x10] sm:$0xff] %v839_v18  ;;  %s1824_s21 = smov (%p862_p2, %s861_s21), 0  ;;  %v853_v25 = vld [vmem:[%s1379_s10 + $0x48] sm:$0xff]  ;;  %v855_v26 = vld [vmem:[%s1379_s10 + $0x50] sm:$0xff]  ;;  %v857_v27 = vld [vmem:[%s1379_s10 + $0x58] sm:$0xff] }
 0x1e9   : >> { %842 = vst [vmem:[%s1375_s22 + $0x18] sm:$0xff] %v841_v19  ;;  %s864_s13 = smul.u32 104, %s1824_s21  ;;  %v859_v28 = vld [vmem:[%s1379_s10 + $0x60] sm:$0xff]  ;;  %s1814_s7 = smov %s1824_s21 }
 0x1ea   : >> { %844 = vst [vmem:[%s1375_s22 + $0x20] sm:$0xff] %v843_v20 }
 0x1eb   : >> { %846 = vst [vmem:[%s1375_s22 + $0x28] sm:$0xff] %v845_v21  ;;  %s866_s15 = scalar_lea.vmem %s1665_s14, %s864_s13 [#allocation4]   ;;  %s867_s16 = scalar_lea.vmem %s1712_s29, %s864_s13  }
 0x1ec   : >> { %848 = vst [vmem:[%s1375_s22 + $0x30] sm:$0xff] %v847_v22  ;;  %s1813_s10 = smov %s866_s15 }
 0x1ed   : >> { %850 = vst [vmem:[%s1375_s22 + $0x38] sm:$0xff] %v849_v23 }
 0x1ee   : >> { %852 = vst [vmem:[%s1375_s22 + $0x40] sm:$0xff] %v851_v24  ;;  %831 = sbr.rel (!%p828_p3) target bundleno = 485 (0x1e5), region = 140 }
 0x1ef   : >> { %854 = vst [vmem:[%s1375_s22 + $0x48] sm:$0xff] %v853_v25 }
 0x1f0   : >> { %856 = vst [vmem:[%s1375_s22 + $0x50] sm:$0xff] %v855_v26 }
 0x1f1   : >> { %858 = vst [vmem:[%s1375_s22 + $0x58] sm:$0xff] %v857_v27 }
 0x1f2   : >> { %860 = vst [vmem:[%s1375_s22 + $0x60] sm:$0xff] %v859_v28  ;;  %s1812_s22 = smov %s867_s16 }
 0x1f3 PF: > { %1263 = sdivrem.u32 %s1822_s18, 13 }
 0x1f4   : > { %s1107_s27 = smul.u32 104, %s1718_s28 }
 0x1f6   : > { %s1783_s25 = scalar_lea.vmem %s1665_s14, %s1107_s27 [#allocation4]   ;;  %s874_s12 = scalar_lea.vmem %s1712_s29, %s1107_s27  }
 0x1fc   : > { %s1264_s9 = spop.drf %1263 }
 0x1fd   : > { %s1265_s17 = spop.drf %1263 }
 0x1fe   : > { %p1109_p4 = scmp.le.s32.totalorder %s1265_s17, 0 }
 0x1ff   : > { %s1389_s24 = smov (!%p1109_p4), %s874_s12   ;;  %s1393_s8 = smov (!%p1109_p4), %s1783_s25  }
 0x200   : > { %973 = sbr.rel (%p1109_p4) target bundleno = 525 (0x20d), region = 145  ;;  %s1397_s6 = smov (!%p1109_p4), 0  }
 0x201   : > { %s1401_s30 = smov (!%p1109_p4), 0  }
 0x205 LB: >> { %v884_v29 = vld [vmem:[%s1395_s8] sm:$0xff]  ;;  %s886_s14 = sadd.s32 1, %s1399_s6  ;;  %s878_s30 = sadd.s32 1, %s1403_s30   ;;  %s1403_s30 = sphi %s1401_s30, %s878_s30   ;;  %s1399_s6 = sphi %s1397_s6, %s1398_s6   ;;  %s1395_s8 = sphi %s1393_s8, %s891_s8   ;;  %s1391_s24 = sphi %s1389_s24, %s892_s24  }
 0x206   : >> { %885 = vst [vmem:[%s1391_s24] sm:$0xff] %v884_v29  ;;  %p887_p5 = scmp.ge.s32.totalorder %s886_s14, %s1265_s17  ;;  %p877_p6 = scmp.ge.s32.totalorder %s878_s30, %s1265_s17 }
 0x208   : >> { %s1826_s14 = smov (%p887_p5, %s886_s14), 0  ;;  %880 = sbr.rel (!%p877_p6) target bundleno = 517 (0x205), region = 151 }
 0x209   : >> { %s1110_s18 = sshll.u32 %s1826_s14, 3  ;;  %s1398_s6 = smov %s1826_s14  }
 0x20a   : >> { %s891_s8 = scalar_lea.vmem %s1783_s25, %s1110_s18 [#allocation4]   ;;  %s892_s24 = scalar_lea.vmem %s874_s12, %s1110_s18  }
 0x20d PF: > { %p15_p9 = scmp.ge.s32.totalorder %s1460_s23, 4   ;;  %s1815_s18 = smov %s1363_s19 }
 0x20e   : > { %s1816_s19 = smov %s1367_s20  ;;  %s1817_s20 = smov %s1470_s26 }
 0x20f   : > { %s1818_s21 = smov %s1460_s23  ;;  %17 = sbr.rel (!%p15_p9) target bundleno = 3 (0x3), region = 162 }
 0x214   :  { %908 = vsyncpa [#allocation3], 1 }
 0x215   :  { %910 = vsyncpa [#allocation3 + $0x1], 1 }

</bundles_post_ra>
